<compile_context>
chip_gen: v7x
topology: tpu7x:2x2x1
jax: 0.10.0
libtpu: 0.0.40
codegen_flags: <defaults>
</compile_context>

<pallas_src>
import functools

import jax
import jax.numpy as jnp
from jax import lax
from jax.experimental import pallas as pl
from jax.experimental.pallas import tpu as pltpu


def _round_up(a, b):
    return (a + b - 1) // b * b


def _head_kernel(x_ref, w1_ref, b1_ref, w2_ref, b2_ref, o_ref, acc_ref, *, inv_s):
    s = pl.program_id(1)

    @pl.when(s == 0)
    def _init():
        acc_ref[...] = jnp.zeros_like(acc_ref)

    # VALU element-wise accumulation of this S chunk (keeps lane structure;
    # no per-step cross-lane reduce). Cast to f32 in-VMEM (no-op for f32 x).
    acc_ref[...] += x_ref[...].astype(jnp.float32)

    @pl.when(s == pl.num_programs(1) - 1)
    def _finalize():
        # Single cross-lane reduce; divide by the TRUE spatial size once.
        pooled = jnp.sum(acc_ref[...], axis=-1) * inv_s            # (tn, C)
        # fc1: weights in PyTorch (hidden, C) layout -> contract on dim 1.
        h = lax.dot_general(pooled, w1_ref[...],
                            dimension_numbers=(((1,), (1,)), ((), ())),
                            preferred_element_type=jnp.float32) + b1_ref[...]
        h = jnp.maximum(h, 0.0)                                    # ReLU
        # fc2: weights padded to (CLS_pad, hidden), contract on dim 1.
        out = lax.dot_general(h, w2_ref[...],
                              dimension_numbers=(((1,), (1,)), ((), ())),
                              preferred_element_type=jnp.float32) + b2_ref[...]
        o_ref[...] = out.astype(o_ref.dtype)                       # lane-dense store


def classification_head(x, w1, b1, w2, b2, *, block_s=128, block_n=8):
    """x: (N, C, D, H, W) with C == in_features (any float dtype).
    w1: (hidden, in_features), b1: (hidden,),
    w2: (num_classes, hidden), b2: (num_classes,)   -- PyTorch Linear layout."""
    N, C, D, H, W = x.shape
    S = D * H * W
    hidden = w1.shape[0]
    num_classes = w2.shape[0]

    # ---- tiled / padded sizes ------------------------------------------------
    CLS = _round_up(max(num_classes, 1), 128)        # lane-dense output width
    tn = block_n if N >= block_n else N              # N tile (8 or whole batch)
    N_pad = _round_up(N, tn)
    if S <= block_s:
        ts, S_pad = S, S                             # block == full S dim
    else:
        ts = block_s                                 # multiple of 128
        S_pad = _round_up(S, ts)

    # ---- wrapper glue (only reshapes / tiny weight padding; x stays native) --
    x3 = x.reshape(N, C, S)                          # free reshape, native dtype
    if N_pad != N or S_pad != S:
        # zero padding: padded S elems add 0 to the sum; padded N rows are sliced off.
        x3 = jnp.pad(x3, ((0, N_pad - N), (0, 0), (0, S_pad - S)))
    w1f = jnp.asarray(w1, jnp.float32)                              # (hidden, C)
    b1r = jnp.asarray(b1, jnp.float32).reshape(1, hidden)           # (1, hidden)
    w2p = jnp.zeros((CLS, hidden), jnp.float32).at[:num_classes].set(
        jnp.asarray(w2, jnp.float32))                               # (CLS, hidden)
    b2p = jnp.zeros((1, CLS), jnp.float32).at[0, :num_classes].set(
        jnp.asarray(b2, jnp.float32))                               # (1, CLS)

    grid = (N_pad // tn, S_pad // ts)
    kernel = functools.partial(_head_kernel, inv_s=1.0 / float(S))

    bytes_accessed = (x3.size * x3.dtype.itemsize
                      + 4 * (w1f.size + b1r.size + w2p.size + b2p.size)
                      + 4 * N_pad * CLS)
    flops = N_pad * C * S_pad + 2 * N_pad * (C * hidden + hidden * CLS)

    out = pl.pallas_call(
        kernel,
        out_shape=jax.ShapeDtypeStruct((N_pad, CLS), jnp.float32),
        grid=grid,
        in_specs=[
            # streamed x tiles (double-buffered by Pallas)
            pl.BlockSpec((tn, C, ts), lambda n, s: (n, 0, s)),
            # weights / biases: constant index_map -> stay resident across S loop
            pl.BlockSpec((hidden, C), lambda n, s: (0, 0)),
            pl.BlockSpec((1, hidden), lambda n, s: (0, 0)),
            pl.BlockSpec((CLS, hidden), lambda n, s: (0, 0)),
            pl.BlockSpec((1, CLS), lambda n, s: (0, 0)),
        ],
        out_specs=pl.BlockSpec((tn, CLS), lambda n, s: (n, 0)),
        scratch_shapes=[pltpu.VMEM((tn, C, ts), jnp.float32)],
        compiler_params=pltpu.CompilerParams(
            dimension_semantics=("parallel", "arbitrary"),
            vmem_limit_bytes=32 * 1024 * 1024,   # fits v7x (64 MiB phys) and below
        ),
        cost_estimate=pl.CostEstimate(
            flops=int(flops), transcendentals=0, bytes_accessed=int(bytes_accessed)),
    )(x3, w1f, b1r, w2p, b2p)

    return out[:N, :num_classes]


if __name__ == "__main__":
    # Small shapes consistent with the module's forward (S = 256 -> 2 S-tiles,
    # so the accumulate/finalize path is actually exercised).
    N, C, D, H, W = 2, 32, 4, 8, 8          # in_features = C = 32
    hidden, num_classes = 64, 10

    key = jax.random.PRNGKey(0)
    kx, kw1, kb1, kw2, kb2 = jax.random.split(key, 5)
    x = jax.random.normal(kx, (N, C, D, H, W), dtype=jnp.float32)
    w1 = jax.random.normal(kw1, (hidden, C), dtype=jnp.float32) * 0.05
    b1 = jax.random.normal(kb1, (hidden,), dtype=jnp.float32) * 0.01
    w2 = jax.random.normal(kw2, (num_classes, hidden), dtype=jnp.float32) * 0.05
    b2 = jax.random.normal(kb2, (num_classes,), dtype=jnp.float32) * 0.01

    out = classification_head(x, w1, b1, w2, b2)
    out = jax.block_until_ready(out)

    # Pure-JAX reference (same math as the PyTorch forward).
    pooled = jnp.mean(x.reshape(N, C, -1), axis=-1)
    ref = jnp.maximum(pooled @ w1.T + b1, 0.0) @ w2.T + b2
    assert out.shape == (N, num_classes)
    assert jnp.allclose(out, ref, atol=1e-4, rtol=1e-4)

    print("KERNEL_OK")
</pallas_src>

<mosaic_0001>
module attributes {stable_mosaic.version = 11 : i64} {
  func.func @_head_kernel(%arg0: i32, %arg1: i32, %arg2: memref<2x32x128xf32, #tpu.memory_space<vmem>>, %arg3: memref<64x32xf32, #tpu.memory_space<vmem>>, %arg4: memref<1x64xf32, #tpu.memory_space<vmem>>, %arg5: memref<128x64xf32, #tpu.memory_space<vmem>>, %arg6: memref<1x128xf32, #tpu.memory_space<vmem>>, %arg7: memref<2x128xf32, #tpu.memory_space<vmem>>, %arg8: memref<2x32x128xf32, #tpu.memory_space<vmem>>) attributes {dimension_semantics = [#tpu.dimension_semantics<parallel>, #tpu.dimension_semantics<arbitrary>], iteration_bounds = array<i64: 1, 2>, scalar_prefetch = 0 : i64, scratch_operands = 1 : i64, tpu.core_type = #tpu.core_type<tc>, window_params = [{transform_indices = @transform_0, window_bounds = array<i64: 2, 32, 128>}, {pipeline_mode = #tpu.pipeline_mode<synchronous>, transform_indices = @transform_1, window_bounds = array<i64: 64, 32>}, {pipeline_mode = #tpu.pipeline_mode<synchronous>, transform_indices = @transform_2, window_bounds = array<i64: 1, 64>}, {pipeline_mode = #tpu.pipeline_mode<synchronous>, transform_indices = @transform_3, window_bounds = array<i64: 128, 64>}, {pipeline_mode = #tpu.pipeline_mode<synchronous>, transform_indices = @transform_4, window_bounds = array<i64: 1, 128>}, {transform_indices = @transform_5, window_bounds = array<i64: 2, 128>}]} {
    %c0_i32 = arith.constant 0 : i32
    %0 = arith.cmpi eq, %arg1, %c0_i32 : i32
    %1 = arith.extui %0 : i1 to i32
    %c0_i32_0 = arith.constant 0 : i32
    %2 = arith.cmpi ne, %1, %c0_i32_0 : i32
    scf.if %2 {
      %cst = arith.constant 0.000000e+00 : f32
      %10 = vector.broadcast %cst : f32 to vector<2x32x128xf32>
      %c0_10 = arith.constant 0 : index
      %c0_11 = arith.constant 0 : index
      %c0_12 = arith.constant 0 : index
      %11 = vector.load %arg8[%c0_10, %c0_11, %c0_12] : memref<2x32x128xf32, #tpu.memory_space<vmem>>, vector<2x32x128xf32>
      tpu.vector_store %arg8[%c0_10, %c0_11, %c0_12], %10 {strides = array<i32>} : memref<2x32x128xf32, #tpu.memory_space<vmem>>, vector<2x32x128xf32>,
    } else {
    }
    %c0 = arith.constant 0 : index
    %c0_1 = arith.constant 0 : index
    %c0_2 = arith.constant 0 : index
    %3 = vector.load %arg8[%c0, %c0_1, %c0_2] : memref<2x32x128xf32, #tpu.memory_space<vmem>>, vector<2x32x128xf32>
    %c0_3 = arith.constant 0 : index
    %c0_4 = arith.constant 0 : index
    %c0_5 = arith.constant 0 : index
    %4 = vector.load %arg2[%c0_3, %c0_4, %c0_5] : memref<2x32x128xf32, #tpu.memory_space<vmem>>, vector<2x32x128xf32>
    %5 = arith.addf %3, %4 : vector<2x32x128xf32>
    %c0_6 = arith.constant 0 : index
    %c0_7 = arith.constant 0 : index
    %c0_8 = arith.constant 0 : index
    %6 = vector.load %arg8[%c0_6, %c0_7, %c0_8] : memref<2x32x128xf32, #tpu.memory_space<vmem>>, vector<2x32x128xf32>
    tpu.vector_store %arg8[%c0_6, %c0_7, %c0_8], %5 {strides = array<i32>} : memref<2x32x128xf32, #tpu.memory_space<vmem>>, vector<2x32x128xf32>,
    %c1_i32 = arith.constant 1 : i32
    %7 = arith.cmpi eq, %arg1, %c1_i32 : i32
    %8 = arith.extui %7 : i1 to i32
    %c0_i32_9 = arith.constant 0 : i32
    %9 = arith.cmpi ne, %8, %c0_i32_9 : i32
    scf.if %9 {
      %c0_10 = arith.constant 0 : index
      %c0_11 = arith.constant 0 : index
      %c0_12 = arith.constant 0 : index
      %10 = vector.load %arg8[%c0_10, %c0_11, %c0_12] : memref<2x32x128xf32, #tpu.memory_space<vmem>>, vector<2x32x128xf32>
      %cst = arith.constant dense<0.000000e+00> : vector<2x32xf32>
      %11 = vector.multi_reduction <add>, %10, %cst [2] : vector<2x32x128xf32> to vector<2x32xf32>
      %cst_13 = arith.constant 3.906250e-03 : f32
      %12 = vector.broadcast %cst_13 : f32 to vector<2x32xf32>
      %13 = arith.mulf %11, %12 : vector<2x32xf32>
      %c0_14 = arith.constant 0 : index
      %c0_15 = arith.constant 0 : index
      %14 = vector.load %arg3[%c0_14, %c0_15] : memref<64x32xf32, #tpu.memory_space<vmem>>, vector<64x32xf32>
      %cst_16 = arith.constant dense<0.000000e+00> : vector<2x64xf32>
      %15 = tpu.matmul %13, %14, %cst_16 {dimension_numbers = #tpu.dot_dimension_numbers<[1], [1], [0], [0], [0, 0, 1, 0], [], []>} : vector<2x32xf32>, vector<64x32xf32>, vector<2x64xf32> -> vector<2x64xf32>
      %c0_17 = arith.constant 0 : index
      %c0_18 = arith.constant 0 : index
      %16 = vector.load %arg4[%c0_17, %c0_18] : memref<1x64xf32, #tpu.memory_space<vmem>>, vector<1x64xf32>
      %17 = vector.broadcast %16 : vector<1x64xf32> to vector<2x64xf32>
      %18 = arith.addf %15, %17 : vector<2x64xf32>
      %cst_19 = arith.constant 0.000000e+00 : f32
      %19 = vector.broadcast %cst_19 : f32 to vector<2x64xf32>
      %20 = arith.maximumf %18, %19 : vector<2x64xf32>
      %c0_20 = arith.constant 0 : index
      %c0_21 = arith.constant 0 : index
      %21 = vector.load %arg5[%c0_20, %c0_21] : memref<128x64xf32, #tpu.memory_space<vmem>>, vector<128x64xf32>
      %cst_22 = arith.constant dense<0.000000e+00> : vector<2x128xf32>
      %22 = tpu.matmul %20, %21, %cst_22 {dimension_numbers = #tpu.dot_dimension_numbers<[1], [1], [0], [0], [0, 0, 1, 0], [], []>} : vector<2x64xf32>, vector<128x64xf32>, vector<2x128xf32> -> vector<2x128xf32>
      %c0_23 = arith.constant 0 : index
      %c0_24 = arith.constant 0 : index
      %23 = vector.load %arg6[%c0_23, %c0_24] : memref<1x128xf32, #tpu.memory_space<vmem>>, vector<1x128xf32>
      %24 = vector.broadcast %23 : vector<1x128xf32> to vector<2x128xf32>
      %25 = arith.addf %22, %24 : vector<2x128xf32>
      %c0_25 = arith.constant 0 : index
      %c0_26 = arith.constant 0 : index
      %26 = vector.load %arg7[%c0_25, %c0_26] : memref<2x128xf32, #tpu.memory_space<vmem>>, vector<2x128xf32>
      tpu.vector_store %arg7[%c0_25, %c0_26], %25 {strides = array<i32>} : memref<2x128xf32, #tpu.memory_space<vmem>>, vector<2x128xf32>,
    } else {
    }
    return
  }
  func.func @transform_0(%arg0: i32, %arg1: i32) -> (i32, i32, i32) {
    %c0_i32 = arith.constant 0 : i32
    %c0_i32_0 = arith.constant 0 : i32
    return %arg0, %c0_i32, %arg1 : i32, i32, i32
  }
  func.func @transform_1(%arg0: i32, %arg1: i32) -> (i32, i32) {
    %c0_i32 = arith.constant 0 : i32
    %c0_i32_0 = arith.constant 0 : i32
    %c0_i32_1 = arith.constant 0 : i32
    return %c0_i32, %c0_i32_0 : i32, i32
  }
  func.func @transform_2(%arg0: i32, %arg1: i32) -> (i32, i32) {
    %c0_i32 = arith.constant 0 : i32
    %c0_i32_0 = arith.constant 0 : i32
    %c0_i32_1 = arith.constant 0 : i32
    return %c0_i32, %c0_i32_0 : i32, i32
  }
  func.func @transform_3(%arg0: i32, %arg1: i32) -> (i32, i32) {
    %c0_i32 = arith.constant 0 : i32
    %c0_i32_0 = arith.constant 0 : i32
    %c0_i32_1 = arith.constant 0 : i32
    return %c0_i32, %c0_i32_0 : i32, i32
  }
  func.func @transform_4(%arg0: i32, %arg1: i32) -> (i32, i32) {
    %c0_i32 = arith.constant 0 : i32
    %c0_i32_0 = arith.constant 0 : i32
    %c0_i32_1 = arith.constant 0 : i32
    return %c0_i32, %c0_i32_0 : i32, i32
  }
  func.func @transform_5(%arg0: i32, %arg1: i32) -> (i32, i32) {
    %c0_i32 = arith.constant 0 : i32
    %c0_i32_0 = arith.constant 0 : i32
    return %arg0, %c0_i32 : i32, i32
  }
}

</mosaic_0001>

<bundles_post_ra>
// kernel: tpu_custom_call.1
= control target key start
LH: loop header
LB: loop body
LE: loop exit
PB: predicated region body
PF: predicated region fallthrough
CT: control target
= control target key end

     0   :  { %10 = vsyncpa [#allocation5], 0  ;;  %s1083_s18 = smov 0   ;;  %s1085_s19 = smov 0   ;;  %s1315_s0 = inlined_call_operand.vmem [shape: f32[2,32,256], index: 0, kind: input, shape index: {}]   ;;  %s1316_s1 = inlined_call_operand.vmem [shape: f32[64,32], index: 1, kind: input, shape index: {}]   ;;  %s1317_s2 = inlined_call_operand.vmem [shape: f32[1,64], index: 2, kind: input, shape index: {}]   ;;  %s1318_s3 = inlined_call_operand.vmem [shape: f32[128,64], index: 3, kind: input, shape index: {}]   ;;  %s1319_s4 = inlined_call_operand.vmem [shape: f32[1,128], index: 4, kind: input, shape index: {}]   ;;  %s1320_s5 = inlined_call_operand.hbm [shape: f32[2,128], index: 5, kind: output, shape index: {}]  }
   0x1   :  { %s1087_s20 = smov 0   ;;  %s1089_s21 = smov 0  }
   0x2   :  { %s1091_s22 = smov 0  }
   0x3 LB: > { %s758_s23 = sadd.s32 4294967295, %s1046_s22   ;;  %s25_s24 = sadd.s32 1, %s1042_s21  ;;  %s1046_s22 = sphi %s1091_s22, %s16_s22   ;;  %s1042_s21 = sphi %s1089_s21, %s1329_s21   ;;  %s1038_s20 = sphi %s1087_s20, %s1328_s20   ;;  %s1034_s19 = sphi %s1085_s19, %s1327_s19   ;;  %s1030_s18 = sphi %s1083_s18, %s1326_s18  }
   0x4   : > { %p26_p0 = scmp.ge.s32.totalorder %s25_s24, 2  ;;  %p44_p1 = scmp.ne.s32.totalorder %s1034_s19, %s1030_s18 }
   0x5   : > { %p45_p2 = scmp.eq.s32.totalorder %s1046_s22, 0  ;;  %s37_s26 = sadd.s32 1, %s1034_s19 }
   0x6   : > { %s1331_s24 = smov (%p26_p0, %s25_s24), 0  ;;  %p760_p5 = scmp.ge.s32.totalorder %s1046_s22, 2 }
   0x7   : > { %p46_p3 = por %p45_p2, %p44_p1  ;;  %s33_s25 = ssub.s32 %s1042_s21, %s1331_s24 }
   0x8   : > { %p35_p4 = scmp.eq.s32.totalorder %s33_s25, 0  ;;  %192 = sbr.rel (%p760_p5) target bundleno = 23 (0x17), region = 32 }
   0xa   : > { %s1119_s27 = scalar_select %p35_p4, %s1034_s19, %s37_s26  }
   0xf   : > { %195 = sbr.rel (!%p46_p3) target bundleno = 23 (0x17), region = 36  ;;  %s197_s28 = sand.u32 (%p46_p3), 1, %s1034_s19  }
  0x10   : > { %s762_s29 = sshll.u32 (%p46_p3), %s1042_s21, 3  ;;  %s761_s30 = sshll.u32 (%p46_p3), %s197_s28, 6 }
  0x11   : > { %s204_s8 = scalar_lea.vmem (%p46_p3), %s1315_s0, %s762_s29  ;;  %s199_s9 = scalar_lea.vmem (%p46_p3), [#allocation3], %s761_s30 }
  0x12   : > { %v246_v0 = vld [vmem:[%s204_s8] sm:$0xff] (%p46_p3)  ;;  %v248_v1 = vld [vmem:[%s204_s8 + $0x10] sm:$0xff] (%p46_p3) }
  0x13   : > { %v250_v2 = vld [vmem:[%s204_s8 + $0x20] sm:$0xff] (%p46_p3)  ;;  %247 = vst [vmem:[%s199_s9] sm:$0xff] (%p46_p3), %v246_v0  ;;  %249 = vst [vmem:[%s199_s9 + $0x8] sm:$0xff] (%p46_p3), %v248_v1  ;;  %v252_v3 = vld [vmem:[%s204_s8 + $0x30] sm:$0xff] (%p46_p3) }
  0x14   : > { %251 = vst [vmem:[%s199_s9 + $0x10] sm:$0xff] (%p46_p3), %v250_v2  ;;  %v254_v4 = vld [vmem:[%s204_s8 + $0x40] sm:$0xff] (%p46_p3)  ;;  %v256_v5 = vld [vmem:[%s204_s8 + $0x50] sm:$0xff] (%p46_p3)  ;;  %253 = vst [vmem:[%s199_s9 + $0x18] sm:$0xff] (%p46_p3), %v252_v3 }
  0x15   : > { %255 = vst [vmem:[%s199_s9 + $0x20] sm:$0xff] (%p46_p3), %v254_v4  ;;  %257 = vst [vmem:[%s199_s9 + $0x28] sm:$0xff] (%p46_p3), %v256_v5  ;;  %v258_v6 = vld [vmem:[%s204_s8 + $0x60] sm:$0xff] (%p46_p3)  ;;  %v260_v7 = vld [vmem:[%s204_s8 + $0x70] sm:$0xff] (%p46_p3) }
  0x16   : > { %259 = vst [vmem:[%s199_s9 + $0x30] sm:$0xff] %v258_v6  ;;  %261 = vst [vmem:[%s199_s9 + $0x38] sm:$0xff] %v260_v7 }
  0x17 PF: > { %p763_p6 = scmp.ge.s32.totalorder %s1046_s22, 1  ;;  %p266_p7 = scmp.lt.s32.totalorder %s1046_s22, 3 }
  0x19   : > { %p267_p8 = pnand %p763_p6, %p266_p7 }
  0x1a   : > { %s273_s10 = sand.u32 (!%p267_p8), 1, %s1030_s18   ;;  %p765_p9 = scmp.ne.s32.totalorder (!%p267_p8), %s1038_s20, 0 }
  0x1b   : > { %270 = sbr.rel (%p267_p8) target bundleno = 671 (0x29f), region = 74  ;;  %s764_s11 = sshll.u32 (!%p267_p8), %s273_s10, 6 }
  0x1c   : > { %s1130_s12 = scalar_lea.vmem (!%p267_p8), [#allocation3], %s764_s11 }
  0x22   : > { %299 = sbr.rel (%p765_p9) target bundleno = 41 (0x29), region = 82  ;;  %v1048_v8 = vmov (!%p765_p9), 0.0  }
  0x23   : > { %300 = vst [vmem:[#allocation2] sm:$0xff] (!%p765_p9), %v1048_v8  ;;  %301 = vst [vmem:[#allocation2 + $0x8] sm:$0xff] (!%p765_p9), %v1048_v8 }
  0x24   : > { %302 = vst [vmem:[#allocation2 + $0x10] sm:$0xff] (!%p765_p9), %v1048_v8  ;;  %303 = vst [vmem:[#allocation2 + $0x18] sm:$0xff] (!%p765_p9), %v1048_v8 }
  0x25   : > { %304 = vst [vmem:[#allocation2 + $0x20] sm:$0xff] (!%p765_p9), %v1048_v8  ;;  %305 = vst [vmem:[#allocation2 + $0x28] sm:$0xff] (!%p765_p9), %v1048_v8 }
  0x26   : > { %306 = vst [vmem:[#allocation2 + $0x30] sm:$0xff] (!%p765_p9), %v1048_v8  ;;  %307 = vst [vmem:[#allocation2 + $0x38] sm:$0xff] (!%p765_p9), %v1048_v8 }
  0x29 PF: > { %v316_v10 = vld [vmem:[%s1130_s12] sm:$0xff]  ;;  %v317_v13 = vld [vmem:[%s1130_s12 + $0x8] sm:$0xff]  ;;  %v318_v15 = vld [vmem:[%s1130_s12 + $0x10] sm:$0xff]  ;;  %p766_p10 = scmp.ne.s32.totalorder %s1038_s20, 1 }
  0x2a   : > { %v308_v9 = vld [vmem:[#allocation2] sm:$0xff]  ;;  %v309_v11 = vld [vmem:[#allocation2 + $0x8] sm:$0xff]  ;;  %v319_v19 = vld [vmem:[%s1130_s12 + $0x18] sm:$0xff]  ;;  %vm447_vm0 = vcmask (!%p766_p10), 261120   ;;  %v1049_v37 = vmov (!%p766_p10), 0.0|0.0   ;;  %vm1050_vm2 = vmmov (!%p766_p10), 0  }
  0x2b   : > { %v324_v12 = vadd.f32 %v316_v10, %v308_v9  ;;  %v310_v14 = vld [vmem:[#allocation2 + $0x10] sm:$0xff]  ;;  %v325_v16 = vadd.f32 %v317_v13, %v309_v11  ;;  %v311_v18 = vld [vmem:[#allocation2 + $0x18] sm:$0xff]  ;;  %v320_v22 = vld [vmem:[%s1130_s12 + $0x20] sm:$0xff]  ;;  %879 = vmatprep.subr.bf16.mxu0 (!%p766_p10), %v1049_v37  ;;  %895 = vmatprep.subr.bf16.mxu1 (!%p766_p10), %v1049_v37  ;;  %v1051_v55 = vmov (!%p766_p10), 0.0   ;;  %vm568_vm3 = vcmask (!%p766_p10), 523264  }
  0x2c   : > { %v326_v17 = vadd.f32 %v318_v15, %v310_v14  ;;  %v312_v20 = vld [vmem:[#allocation2 + $0x20] sm:$0xff]  ;;  %v327_v21 = vadd.f32 %v319_v19, %v311_v18  ;;  %v313_v23 = vld [vmem:[#allocation2 + $0x28] sm:$0xff]  ;;  %v322_v28 = vld [vmem:[%s1130_s12 + $0x30] sm:$0xff]  ;;  %343 = sbr.rel (%p766_p10) target bundleno = 646 (0x286), region = 86  ;;  %841 = vmatprep.mubr.msk.f32.mxu0 (!%p766_p10), %vm1050_vm2, %v1051_v55  ;;  %876 = vmatprep.mubr.msk.f32.mxu1 (!%p766_p10), %vm1050_vm2, %v1051_v55  ;;  %vm410_vm5 = vcmask (!%p766_p10), 130112   ;;  %vm417_vm6 = vcmask (!%p766_p10), 195712  }
  0x2d   : > { %332 = vst [vmem:[#allocation2] sm:$0xff] %v324_v12  ;;  %v321_v24 = vld [vmem:[%s1130_s12 + $0x28] sm:$0xff]  ;;  %333 = vst [vmem:[#allocation2 + $0x8] sm:$0xff] %v325_v16  ;;  %v328_v25 = vadd.f32 %v320_v22, %v312_v20  ;;  %v314_v27 = vld [vmem:[#allocation2 + $0x30] sm:$0xff]  ;;  %vm424_vm7 = vcmask (!%p766_p10), 261312   ;;  %vm445_vm8 = vcmask (!%p766_p10), 1041409  }
  0x2e   : > { %334 = vst [vmem:[#allocation2 + $0x10] sm:$0xff] %v326_v17  ;;  %v329_v26 = vadd.f32 %v321_v24, %v313_v23  ;;  %v315_v29 = vld [vmem:[#allocation2 + $0x38] sm:$0xff]  ;;  %335 = vst [vmem:[#allocation2 + $0x18] sm:$0xff] %v327_v21  ;;  %v330_v30 = vadd.f32 %v322_v28, %v314_v27  ;;  %v376_v38 = vld [vmem:[%s1316_s1] sm:$0xff] (!%p766_p10)  ;;  %v399_v17 = vlaneseq (!%p766_p10) }
  0x2f   : > { %v323_v31 = vld [vmem:[%s1130_s12 + $0x38] sm:$0xff]  ;;  %336 = vst [vmem:[#allocation2 + $0x20] sm:$0xff] %v328_v25  ;;  %v377_v39 = vld [vmem:[%s1316_s1 + $0x8] sm:$0xff] (!%p766_p10)  ;;  %vm1152_vm1 = vmpackc.low (!%p766_p10), %vm447_vm0, %vm447_vm0 }
  0x30   : > { %337 = vst [vmem:[#allocation2 + $0x28] sm:$0xff] %v329_v26  ;;  %v331_v32 = vadd.f32 %v323_v31, %v315_v29  ;;  %338 = vst [vmem:[#allocation2 + $0x30] sm:$0xff] %v330_v30  ;;  %v880_v41 = vpack.c.bf16 (!%p766_p10), %v377_v39, %v376_v38  ;;  %v378_v44 = vld [vmem:[%s1316_s1 + $0x10] sm:$0xff] (!%p766_p10)  ;;  %v379_v45 = vld [vmem:[%s1316_s1 + $0x18] sm:$0xff] (!%p766_p10)  ;;  %v400_v20 = vand.u32 (!%p766_p10), 127, %v399_v17  ;;  %v402_v22 = vshrl.u32 (!%p766_p10), %v399_v17, 7 }
  0x31   : > { %v884_v48 = vpack.c.bf16 (!%p766_p10), %v379_v45, %v378_v44  ;;  %v380_v49 = vld [vmem:[%s1316_s1 + $0x20] sm:$0xff] (!%p766_p10)  ;;  %v381_v50 = vld [vmem:[%s1316_s1 + $0x28] sm:$0xff] (!%p766_p10)  ;;  %v382_v52 = vld [vmem:[%s1316_s1 + $0x30] sm:$0xff] (!%p766_p10) }
  0x32   : > { %339 = vst [vmem:[#allocation2 + $0x38] sm:$0xff] %v331_v32  ;;  %882 = vmatpush3.bf16.xpose.msk.msra.mxu0 (!%p766_p10), %vm1152_vm1, %v880_v41  ;;  %v888_v51 = vpack.c.bf16 (!%p766_p10), %v381_v50, %v380_v49  ;;  %v383_v53 = vld [vmem:[%s1316_s1 + $0x38] sm:$0xff] (!%p766_p10)  ;;  %v545_v56 = vld [vmem:[%s1318_s3] sm:$0xff] (!%p766_p10)  ;;  %v546_v57 = vld [vmem:[%s1318_s3 + $0x8] sm:$0xff] (!%p766_p10)  ;;  %v405_v21 = vadd.s32 (!%p766_p10), 4294967288, %v400_v20  ;;  %v412_v25 = vadd.s32 (!%p766_p10), 4294967280, %v400_v20  ;;  %v403_v30 = vsub.s32 (!%p766_p10), %v400_v20, %v402_v22 }
  0x33   : > { %883 = vmatprep.subr.bf16.mxu0 %v1049_v37  ;;  %v892_v54 = vpack.c.bf16 %v383_v53, %v382_v52  ;;  %v896_v58 = vpack.c.bf16 %v546_v57, %v545_v56  ;;  %vm1193_vm4 = vmpackc.low %vm568_vm3, %vm568_vm3  ;;  %v547_v60 = vld [vmem:[%s1318_s3 + $0x10] sm:$0xff]  ;;  %v548_v61 = vld [vmem:[%s1318_s3 + $0x18] sm:$0xff]  ;;  %v419_v29 = vadd.s32 4294967272, %v400_v20 }
  0x34   : > { %v344_v34 = vld [vmem:[#allocation2] sm:$0xff]  ;;  %v345_v36 = vld [vmem:[#allocation2 + $0x8] sm:$0xff]  ;;  %v900_v62 = vpack.c.bf16 %v548_v61, %v547_v60  ;;  %v551_v2 = vld [vmem:[%s1318_s3 + $0x30] sm:$0xff]  ;;  %v408_v26 = vsub.s32 %v405_v21, %v402_v22  ;;  %v415_v31 = vsub.s32 %v412_v25, %v402_v22 }
  0x35   : > { %352 = vadd.xlane.f32.xlu0 %v344_v34  ;;  %v346_v43 = vld [vmem:[#allocation2 + $0x10] sm:$0xff]  ;;  %v347_v47 = vld [vmem:[#allocation2 + $0x18] sm:$0xff]  ;;  %898 = vmatpush3.bf16.xpose.msk.msra.mxu1 %vm1193_vm4, %v896_v58  ;;  %v549_v63 = vld [vmem:[%s1318_s3 + $0x20] sm:$0xff]  ;;  %v422_v40 = vsub.s32 %v419_v29, %v402_v22 }
  0x36   : > { %v348_v33 = vld [vmem:[#allocation2 + $0x20] sm:$0xff]  ;;  %899 = vmatprep.subr.bf16.mxu1 %v1049_v37  ;;  %v550_v0 = vld [vmem:[%s1318_s3 + $0x28] sm:$0xff]  ;;  %v552_v3 = vld [vmem:[%s1318_s3 + $0x38] sm:$0xff] }
  0x37   : > { %360 = vadd.xlane.f32.xlu1 %v348_v33  ;;  %v349_v35 = vld [vmem:[#allocation2 + $0x28] sm:$0xff]  ;;  %v350_v42 = vld [vmem:[#allocation2 + $0x30] sm:$0xff]  ;;  %v904_v1 = vpack.c.bf16 %v550_v0, %v549_v63  ;;  %v908_v4 = vpack.c.bf16 %v552_v3, %v551_v2  ;;  %v553_v5 = vld [vmem:[%s1318_s3 + $0x40] sm:$0xff] }
  0x38   : > { %v554_v6 = vld [vmem:[%s1318_s3 + $0x48] sm:$0xff]  ;;  %v555_v8 = vld [vmem:[%s1318_s3 + $0x50] sm:$0xff]  ;;  %v556_v9 = vld [vmem:[%s1318_s3 + $0x58] sm:$0xff] }
  0x39   : > { %354 = vadd.xlane.f32.xlu0 %v345_v36  ;;  %v351_v46 = vld [vmem:[#allocation2 + $0x38] sm:$0xff]  ;;  %v912_v7 = vpack.c.bf16 %v554_v6, %v553_v5  ;;  %v916_v10 = vpack.c.bf16 %v556_v9, %v555_v8  ;;  %v557_v11 = vld [vmem:[%s1318_s3 + $0x60] sm:$0xff]  ;;  %v558_v12 = vld [vmem:[%s1318_s3 + $0x68] sm:$0xff] }
  0x3a   : > { %886 = vmatpush3.bf16.xpose.msk.msra.mxu0 %vm1152_vm1, %v884_v48  ;;  %v920_v13 = vpack.c.bf16 %v558_v12, %v557_v11  ;;  %v559_v14 = vld [vmem:[%s1318_s3 + $0x70] sm:$0xff]  ;;  %v560_v15 = vld [vmem:[%s1318_s3 + $0x78] sm:$0xff]  ;;  %v767_v58 = vld [vmem:[%s1317_s2] ss:$0 sm:$0xff] }
  0x3b   : > { %362 = vadd.xlane.f32.xlu1 %v349_v35  ;;  %887 = vmatprep.subr.bf16.mxu0 %v1049_v37  ;;  %v924_v16 = vpack.c.bf16 %v560_v15, %v559_v14  ;;  %v777_v63 = vld [vmem:[%s1319_s4] ss:$0 sm:$0xff] }
  0x3d   : > { %356 = vadd.xlane.f32.xlu0 %v346_v43  ;;  %902 = vmatpush3.bf16.xpose.msk.msra.mxu1 %vm1193_vm4, %v900_v62 }
  0x3e   : > { %903 = vmatprep.subr.bf16.mxu1 %v1049_v37 }
  0x3f   : > { %364 = vadd.xlane.f32.xlu1 %v350_v42 }
  0x41   : > { %358 = vadd.xlane.f32.xlu0 %v347_v47 }
  0x42   : > { %890 = vmatpush3.bf16.xpose.msk.msra.mxu0 %vm1152_vm1, %v888_v51 }
  0x43   : > { %366 = vadd.xlane.f32.xlu1 %v351_v46  ;;  %891 = vmatprep.subr.bf16.mxu0 %v1049_v37 }
  0x45   : > { %906 = vmatpush3.bf16.xpose.msk.msra.mxu1 %vm1193_vm4, %v904_v1 }
  0x46   : > { %907 = vmatprep.subr.bf16.mxu1 %v1049_v37 }
  0x4a   : > { %894 = vmatpush3.bf16.xpose.msk.msra.mxu0 %vm1152_vm1, %v892_v54 }
  0x4d   : > { %910 = vmatpush3.bf16.xpose.msk.msra.mxu1 %vm1193_vm4, %v908_v4 }
  0x4e   : > { %911 = vmatprep.subr.bf16.mxu1 %v1049_v37 }
  0x55   : > { %914 = vmatpush3.bf16.xpose.msk.msra.mxu1 %vm1193_vm4, %v912_v7 }
  0x56   : > { %915 = vmatprep.subr.bf16.mxu1 %v1049_v37 }
  0x5d   : > { %918 = vmatpush3.bf16.xpose.msk.msra.mxu1 %vm1193_vm4, %v916_v10 }
  0x5e   : > { %919 = vmatprep.subr.bf16.mxu1 %v1049_v37 }
  0x65   : > { %922 = vmatpush3.bf16.xpose.msk.msra.mxu1 %vm1193_vm4, %v920_v13 }
  0x66   : > { %923 = vmatprep.subr.bf16.mxu1 %v1049_v37 }
  0x6d   : > { %926 = vmatpush3.bf16.xpose.msk.msra.mxu1 %vm1193_vm4, %v924_v16 }
  0xc2   : > { %v353_v19 = vpop.xlane.xlu0 %352 }
  0xc3   : > { %v368_v35 = vmul.f32 0.00390625, %v353_v19 }
  0xc4   : > { %v361_v18 = vpop.xlane.xlu1 %360 }
  0xc5   : > { %v372_v34 = vmul.f32 0.00390625, %v361_v18  ;;  %v404_v46 = vrot.slane %v368_v35, %v403_v30 }
  0xc6   : > { %v355_v24 = vpop.xlane.xlu0 %354 }
  0xc7   : > { %v369_v28 = vmul.f32 0.00390625, %v355_v24  ;;  %v429_v45 = vrot.slane %v372_v34, %v403_v30 }
  0xc8   : > { %v363_v23 = vpop.xlane.xlu1 %362 }
  0xc9   : > { %v373_v27 = vmul.f32 0.00390625, %v363_v23  ;;  %v409_v39 = vrot.slane %v369_v28, %v408_v26 }
  0xca   : > { %v357_v33 = vpop.xlane.xlu0 %356 }
  0xcb   : > { %v370_v37 = vmul.f32 0.00390625, %v357_v33  ;;  %v433_v38 = vrot.slane %v373_v27, %v408_v26  ;;  %v411_v50 = vsel %vm410_vm5, %v409_v39, %v404_v46 }
  0xcc   : > { %v365_v32 = vpop.xlane.xlu1 %364 }
  0xcd   : > { %v374_v36 = vmul.f32 0.00390625, %v365_v32  ;;  %v416_v42 = vrot.slane %v370_v37, %v415_v31  ;;  %v434_v49 = vsel %vm410_vm5, %v433_v38, %v429_v45 }
  0xce   : > { %v359_v44 = vpop.xlane.xlu0 %358 }
  0xcf   : > { %v438_v41 = vrot.slane %v374_v36, %v415_v31  ;;  %v371_v48 = vmul.f32 0.00390625, %v359_v44  ;;  %v418_v54 = vsel %vm417_vm6, %v416_v42, %v411_v50 }
  0xd0   : > { %v367_v43 = vpop.xlane.xlu1 %366 }
  0xd1   : > { %v375_v47 = vmul.f32 0.00390625, %v367_v43  ;;  %v423_v52 = vrot.slane %v371_v48, %v422_v40  ;;  %v439_v53 = vsel %vm417_vm6, %v438_v41, %v434_v49 }
  0xd3   : > { %v443_v51 = vrot.slane %v375_v47, %v422_v40  ;;  %v425_v55 = vsel %vm424_vm7, %v423_v52, %v418_v54 }
  0xd5   : > { %v444_v56 = vsel %vm424_vm7, %v443_v51, %v439_v53 }
  0xd6   : > { %v446_v57 = vsel %vm445_vm8, %v444_v56, %v425_v55 }
  0xd7   : > { %842 = vmatmul.mubr.msk.f32.vlgmr.msra.gmra.mrb[0].mxu0 %vm447_vm0, %v446_v57 }
 0x1aa   : > { %v540_v59 = vpop.f32.mrb[0].mxu0 }
 0x1ab   : > { %v541_v60 = vadd.f32 %v767_v58, %v540_v59  ;;  %v843_v61 = vpop.f32.mrb[1].mxu0 }
 0x1ad   : > { %v544_v62 = vmax.f32 %v541_v60, 0.0 }
 0x1af   : > { %877 = vmatmul.mubr.msk.f32.vlgmr.msra.gmra.mrb[0].mxu1 %vm568_vm3, %v544_v62 }
 0x282   : > { %v686_v0 = vpop.f32.mrb[0].mxu1 }
 0x283   : > { %v687_v1 = vadd.f32 %v777_v63, %v686_v0  ;;  %v878_v2 = vpop.f32.mrb[1].mxu1 }
 0x285   : > { %690 = vst [vmem:[#allocation4] sm:$0x3] %v687_v1 }
 0x286 PF: > { %p1274_p11 = scmp.eq.s32.totalorder %s758_s23, 1  ;;  %s1052_s9 = smov [#allocation4]  }
 0x287   : > { %s700_s10 = sshll.u32 %s1052_s9, 4  ;;  %s701_s10 = int_to_ptr.vmem [resolvable:$true] %s700_s10 }
 0x288   : > { %s978_s11 = scalar_lea.vmem %s701_s10, 32  ;;  %p985_p1 = scmp.lt.s32.totalorder %s701_s10, %s701_s10 }
 0x289   : > { %p979_p12 = scmp.ne.s32.totalorder %s701_s10, %s978_s11  ;;  %p986_p2 = scmp.lt.s32.totalorder %s978_s11, %s978_s11 }
 0x28b   : > { %p980_p13 = pnand %p979_p12, %p1274_p11  ;;  %p987_p3 = por %p986_p2, %p985_p1 }
 0x28d   : > { %p981_p0 = pneg %p980_p13 }
 0x28f   : > { %p988_p4 = pnand %p987_p3, %p981_p0 }
 0x291   : > { %991 = shalt.err (!%p988_p4)
}
 0x292   : > { %s992_s23 = scalar_lea.hbm %s1320_s5, 32 }
 0x293   : > { %p993_p5 = scmp.ne.s32.totalorder %s1320_s5, %s992_s23  ;;  %p998_p8 = scmp.lt.u32.totalorder %s992_s23, %s1320_s5 }
 0x295   : > { %p994_p6 = pnand %p993_p5, %p1274_p11 }
 0x297   : > { %p995_p7 = pneg %p994_p6 }
 0x299   : > { %p1000_p9 = pnand %p998_p8, %p995_p7 }
 0x29b   : > { %1003 = shalt.err (!%p1000_p9)
}
 0x29c   : > { %928 = dma.vmem_to_hbm [thread:$0]  (%p1274_p11), %s701_s10, 32, %s1320_s5, [#allocation5]  }
 0x29d   : > { %1025 = dma.done.wait (%p1274_p11), [#allocation5], 32  }
 0x29e   : > { %1027 = vsyncadd (%p1274_p11), [#allocation5], 4294967264 }
 0x29f PF: > { %s16_s22 = sadd.s32 1, %s1046_s22   ;;  %s1326_s18 = smov %s1034_s19 }
 0x2a0   : > { %p13_p10 = scmp.ge.s32.totalorder %s16_s22, 4   ;;  %s1327_s19 = smov %s1119_s27 }
 0x2a1   : > { %s1328_s20 = smov %s1042_s21  ;;  %s1329_s21 = smov %s1331_s24 }
 0x2a2   :  { %15 = sbr.rel (!%p13_p10) target bundleno = 3 (0x3), region = 119 }
 0x2a9   :  { %713 = vsyncpa [#allocation5], 1 }
 0x2aa   :  { %715 = vsyncpa [#allocation5 + $0x1], 1 }

</bundles_post_ra>
